<compile_context>
chip_gen: v7x
topology: tpu7x:2x2x1
jax: 0.10.0
libtpu: 0.0.40
codegen_flags: <defaults>
</compile_context>

<pallas_src>
import functools

import jax
import jax.numpy as jnp
from jax import lax
from jax.experimental import pallas as pl
from jax.experimental.pallas import tpu as pltpu

EPS = 1e-5
LANE = 128
SUBLANE = 8


def _round_up(n, m):
    return ((n + m - 1) // m) * m


def _cdiv(a, b):
    return (a + b - 1) // b


def _vmem_budget_bytes():
    """Per-generation VMEM budget (bytes) used for tiling and vmem_limit_bytes."""
    cap = 64 * 1024 * 1024
    try:
        cap = int(getattr(pltpu.get_tpu_info(), "vmem_capacity_bytes", cap))
    except Exception:
        pass
    # Use at most half of physical VMEM (Mosaic internal scratch + headroom),
    # never more than 64 MiB:  v5e/v6e (128 MiB) -> 64 MiB,  v7x (64 MiB) -> 32 MiB.
    return max(16 * 1024 * 1024, min(cap // 2, 64 * 1024 * 1024))


# --------------------------------------------------------------------------- #
# Kernels
# --------------------------------------------------------------------------- #
def _fused_single_pass_kernel(x_ref, gamma_ref, beta_ref, w_ref, b_ref, o_ref, *, inv_b):
    """Whole batch resident in VMEM: stats + BN + Linear + sigmoid in one shot."""
    x = x_ref[...]                                            # (B, F)
    mean = jnp.sum(x, axis=0, keepdims=True) * inv_b          # (1, F)
    xc = x - mean
    var = jnp.sum(xc * xc, axis=0, keepdims=True) * inv_b     # exact centered variance
    scale = gamma_ref[...] * lax.rsqrt(var + EPS)             # (1, F)
    x_bn = xc * scale + beta_ref[...]
    z = jnp.dot(x_bn, w_ref[...], preferred_element_type=jnp.float32) + b_ref[...]
    o_ref[...] = 0.5 * jnp.tanh(0.5 * z) + 0.5                # sigmoid, single EUP op


def _batch_stats_kernel(off_ref, x_ref, s1_ref, s2_ref):
    """Accumulate per-feature sum / sum-of-squares of (x - offset) over batch tiles.

    Grid is (n_split, tiles_per_split): the leading 'parallel' axis lets v7x's two
    TensorCores each reduce half of the batch into their own 8-row partial block
    (only row 0 of each block is used; the other rows stay zero).
    """
    @pl.when(pl.program_id(1) == 0)
    def _():
        s1_ref[...] = jnp.zeros_like(s1_ref)
        s2_ref[...] = jnp.zeros_like(s2_ref)

    xs = x_ref[...] - off_ref[...]                            # shifted for numerical stability
    s1_ref[0:1, :] += jnp.sum(xs, axis=0, keepdims=True)
    s2_ref[0:1, :] += jnp.sum(xs * xs, axis=0, keepdims=True)


def _matmul_sigmoid_kernel(x_ref, w_ref, b_ref, o_ref):
    """y = sigmoid(x @ W_scaled + b_fused); BN affine already folded into W / b."""
    z = jnp.dot(x_ref[...], w_ref[...], preferred_element_type=jnp.float32) + b_ref[...]
    o_ref[...] = 0.5 * jnp.tanh(0.5 * z) + 0.5


# --------------------------------------------------------------------------- #
# Wrapper
# --------------------------------------------------------------------------- #
def logistic_regression_forward(x, gamma, beta, weight, bias, *,
                                single_pass=None, max_tile_rows=2048):
    """Training-mode BatchNorm1d -> Linear -> Sigmoid.

    x: (B, F) f32.  weight: (O, F) PyTorch layout.  Returns (B, O) f32.
    single_pass: None = auto (VMEM-budget gated), True/False = force.
    """
    B, F = x.shape
    O = weight.shape[0]
    O_pad = _round_up(O, LANE)
    inv_b = 1.0 / B
    budget = _vmem_budget_bytes()

    x = x.astype(jnp.float32)
    gamma2 = gamma.reshape(1, F).astype(jnp.float32)
    beta2 = beta.reshape(1, F).astype(jnp.float32)
    # Weight pre-transposed once to the MXU-native (K, N) = (F, O) layout.
    # TODO(synk): in production, pad/transpose W and b once at load time, not per call.
    w_t = weight.astype(jnp.float32).T                        # (F, O)
    bias_f = bias.astype(jnp.float32).reshape(1, O)

    fast_bytes = 4 * (B * F + F * O_pad + B * O_pad + 3 * F + O_pad)
    use_single = (fast_bytes <= int(0.7 * budget)) if single_pass is None else bool(single_pass)

    if use_single:
        # ---------------- single fused kernel (x read from HBM once) ----------------
        w_pad = jnp.pad(w_t, ((0, 0), (0, O_pad - O)))
        b_pad = jnp.pad(bias_f, ((0, 0), (0, O_pad - O)))
        out_pad = pl.pallas_call(
            functools.partial(_fused_single_pass_kernel, inv_b=inv_b),
            out_shape=jax.ShapeDtypeStruct((B, O_pad), jnp.float32),
            compiler_params=pltpu.CompilerParams(vmem_limit_bytes=budget),
        )(x, gamma2, beta2, w_pad, b_pad)
        return out_pad[:, :O]

    # -------------------------- two-pass tiled path --------------------------
    # Tile rows from the pass-2 VMEM budget: double-buffered x tile + double-
    # buffered out tile + (conservatively) a double-buffered resident weight.
    usable = int(0.8 * budget)
    resident = 4 * (2 * F * O_pad + 2 * O_pad + F)
    per_row = 4 * 2 * (F + O_pad)
    cap_rows = max(SUBLANE, (usable - resident) // per_row)
    cap_rows = max(SUBLANE, min(cap_rows, int(max_tile_rows)))

    B8 = _round_up(B, SUBLANE)
    n_tiles = max(1, _cdiv(B8, cap_rows))
    n_split = 2 if n_tiles >= 2 else 1            # feed both v7x TensorCores in pass 1
    n_tiles = n_split * _cdiv(n_tiles, n_split)
    tile_b = _round_up(_cdiv(B8, n_tiles), SUBLANE)
    b_padded = n_tiles * tile_b
    tiles_per_split = n_tiles // n_split

    # Shift offset for numerically stable variance; padded rows are copies of the
    # offset row so they contribute exactly zero to the shifted sums.
    offset = x[0:1, :]
    if b_padded != B:
        x_p = jnp.concatenate([x, jnp.broadcast_to(offset, (b_padded - B, F))], axis=0)
    else:
        x_p = x

    # ---- pass 1: per-feature shifted sums (HBM-bound reduction) ----
    s1_part, s2_part = pl.pallas_call(
        _batch_stats_kernel,
        out_shape=(jax.ShapeDtypeStruct((n_split * SUBLANE, F), jnp.float32),
                   jax.ShapeDtypeStruct((n_split * SUBLANE, F), jnp.float32)),
        grid=(n_split, tiles_per_split),
        in_specs=[pl.BlockSpec((1, F), lambda c, i: (0, 0)),
                  pl.BlockSpec((tile_b, F),
                               lambda c, i: (c * tiles_per_split + i, 0))],
        out_specs=(pl.BlockSpec((SUBLANE, F), lambda c, i: (c, 0)),
                   pl.BlockSpec((SUBLANE, F), lambda c, i: (c, 0))),
        compiler_params=pltpu.CompilerParams(
            dimension_semantics=("parallel", "arbitrary"),
            vmem_limit_bytes=budget),
    )(offset, x_p)
    s1 = jnp.sum(s1_part, axis=0, keepdims=True)              # unused rows are zero
    s2 = jnp.sum(s2_part, axis=0, keepdims=True)

    # ---- grid-invariant work, done exactly once in plain JAX ----
    mean = offset + s1 * inv_b
    var = jnp.maximum(s2 * inv_b - (s1 * inv_b) ** 2, 0.0)    # biased (training) variance
    scale = gamma2 * lax.rsqrt(var + EPS)                     # (1, F)
    shift = beta2 - mean * scale                              # (1, F)
    w_scaled = jnp.pad(w_t * scale.reshape(F, 1), ((0, 0), (0, O_pad - O)))   # (F, O_pad)
    b_fused = jnp.pad(shift @ w_t + bias_f, ((0, 0), (0, O_pad - O)))         # (1, O_pad)

    # ---- pass 2: y = sigmoid(x @ W_scaled + b_fused), batch-parallel ----
    out_pad = pl.pallas_call(
        _matmul_sigmoid_kernel,
        out_shape=jax.ShapeDtypeStruct((b_padded, O_pad), jnp.float32),
        grid=(n_tiles,),
        in_specs=[pl.BlockSpec((tile_b, F), lambda i: (i, 0)),      # x tile, streamed
                  pl.BlockSpec((F, O_pad), lambda i: (0, 0)),       # folded weight, resident
                  pl.BlockSpec((1, O_pad), lambda i: (0, 0))],      # folded bias, resident
        out_specs=pl.BlockSpec((tile_b, O_pad), lambda i: (i, 0)),
        compiler_params=pltpu.CompilerParams(
            dimension_semantics=("parallel",),
            vmem_limit_bytes=budget),
    )(x_p, w_scaled, b_fused)

    return out_pad[:B, :O]


# --------------------------------------------------------------------------- #
# Self-test
# --------------------------------------------------------------------------- #
if __name__ == "__main__":
    def ref_forward(x, gamma, beta, weight, bias):
        mu = jnp.mean(x, axis=0, keepdims=True)
        v = jnp.mean((x - mu) ** 2, axis=0, keepdims=True)
        x_bn = (x - mu) / jnp.sqrt(v + EPS) * gamma + beta
        return jax.nn.sigmoid(x_bn @ weight.T + bias)

    key = jax.random.PRNGKey(0)

    # ---- test 1: small shapes -> single fused kernel (fast path) ----
    B, F, O = 8, 32, 16
    kx, kg, kb_, kw, kbi, key = jax.random.split(key, 6)
    x = jax.random.normal(kx, (B, F), dtype=jnp.float32) * 2.0 + 3.0   # nonzero mean
    gamma = jax.random.uniform(kg, (F,), minval=0.5, maxval=1.5, dtype=jnp.float32)
    beta = jax.random.normal(kb_, (F,), dtype=jnp.float32) * 0.1
    bound = 1.0 / (F ** 0.5)
    weight = jax.random.uniform(kw, (O, F), minval=-bound, maxval=bound, dtype=jnp.float32)
    bias = jax.random.uniform(kbi, (O,), minval=-bound, maxval=bound, dtype=jnp.float32)

    out = jax.block_until_ready(logistic_regression_forward(x, gamma, beta, weight, bias))
    assert out.shape == (B, O)
    assert jnp.allclose(out, ref_forward(x, gamma, beta, weight, bias), atol=1e-5, rtol=1e-5)

    # ---- test 2: awkward batch (not a multiple of 8) -> two-pass tiled path ----
    B2, F2, O2 = 1030, 64, 16
    kx, kg, kb_, kw, kbi, key = jax.random.split(key, 6)
    x2 = jax.random.normal(kx, (B2, F2), dtype=jnp.float32) * 1.5 + 2.0
    gamma2_ = jax.random.uniform(kg, (F2,), minval=0.5, maxval=1.5, dtype=jnp.float32)
    beta2_ = jax.random.normal(kb_, (F2,), dtype=jnp.float32) * 0.1
    bound2 = 1.0 / (F2 ** 0.5)
    weight2 = jax.random.uniform(kw, (O2, F2), minval=-bound2, maxval=bound2, dtype=jnp.float32)
    bias2 = jax.random.uniform(kbi, (O2,), minval=-bound2, maxval=bound2, dtype=jnp.float32)

    out2 = jax.block_until_ready(
        logistic_regression_forward(x2, gamma2_, beta2_, weight2, bias2,
                                    single_pass=False, max_tile_rows=128))
    assert out2.shape == (B2, O2)
    assert jnp.allclose(out2, ref_forward(x2, gamma2_, beta2_, weight2, bias2),
                        atol=1e-5, rtol=1e-5)

    print("KERNEL_OK")
</pallas_src>

<mosaic_0001>
module attributes {stable_mosaic.version = 11 : i64} {
  func.func @_fused_single_pass_kernel(%arg0: memref<8x32xf32, #tpu.memory_space<vmem>>, %arg1: memref<1x32xf32, #tpu.memory_space<vmem>>, %arg2: memref<1x32xf32, #tpu.memory_space<vmem>>, %arg3: memref<32x128xf32, #tpu.memory_space<vmem>>, %arg4: memref<1x128xf32, #tpu.memory_space<vmem>>, %arg5: memref<8x128xf32, #tpu.memory_space<vmem>>) attributes {dimension_semantics = [], scalar_prefetch = 0 : i64, scratch_operands = 0 : i64, tpu.core_type = #tpu.core_type<tc>} {
    %c0 = arith.constant 0 : index
    %c0_0 = arith.constant 0 : index
    %0 = vector.load %arg0[%c0, %c0_0] : memref<8x32xf32, #tpu.memory_space<vmem>>, vector<8x32xf32>
    %cst = arith.constant dense<0.000000e+00> : vector<32xf32>
    %1 = vector.multi_reduction <add>, %0, %cst [0] : vector<8x32xf32> to vector<32xf32>
    %2 = vector.shape_cast %1 : vector<32xf32> to vector<1x32xf32>
    %cst_1 = arith.constant 1.250000e-01 : f32
    %3 = vector.broadcast %cst_1 : f32 to vector<1x32xf32>
    %4 = arith.mulf %2, %3 : vector<1x32xf32>
    %5 = vector.broadcast %4 : vector<1x32xf32> to vector<8x32xf32>
    %6 = arith.subf %0, %5 : vector<8x32xf32>
    %7 = arith.mulf %6, %6 : vector<8x32xf32>
    %cst_2 = arith.constant dense<0.000000e+00> : vector<32xf32>
    %8 = vector.multi_reduction <add>, %7, %cst_2 [0] : vector<8x32xf32> to vector<32xf32>
    %9 = vector.shape_cast %8 : vector<32xf32> to vector<1x32xf32>
    %cst_3 = arith.constant 1.250000e-01 : f32
    %10 = vector.broadcast %cst_3 : f32 to vector<1x32xf32>
    %11 = arith.mulf %9, %10 : vector<1x32xf32>
    %c0_4 = arith.constant 0 : index
    %c0_5 = arith.constant 0 : index
    %12 = vector.load %arg1[%c0_4, %c0_5] : memref<1x32xf32, #tpu.memory_space<vmem>>, vector<1x32xf32>
    %cst_6 = arith.constant 9.99999974E-6 : f32
    %13 = vector.broadcast %cst_6 : f32 to vector<1x32xf32>
    %14 = arith.addf %11, %13 : vector<1x32xf32>
    %15 = math.rsqrt %14 : vector<1x32xf32>
    %16 = arith.mulf %12, %15 : vector<1x32xf32>
    %17 = vector.broadcast %16 : vector<1x32xf32> to vector<8x32xf32>
    %18 = arith.mulf %6, %17 : vector<8x32xf32>
    %c0_7 = arith.constant 0 : index
    %c0_8 = arith.constant 0 : index
    %19 = vector.load %arg2[%c0_7, %c0_8] : memref<1x32xf32, #tpu.memory_space<vmem>>, vector<1x32xf32>
    %20 = vector.broadcast %19 : vector<1x32xf32> to vector<8x32xf32>
    %21 = arith.addf %18, %20 : vector<8x32xf32>
    %c0_9 = arith.constant 0 : index
    %c0_10 = arith.constant 0 : index
    %22 = vector.load %arg3[%c0_9, %c0_10] : memref<32x128xf32, #tpu.memory_space<vmem>>, vector<32x128xf32>
    %cst_11 = arith.constant dense<0.000000e+00> : vector<8x128xf32>
    %23 = tpu.matmul %21, %22, %cst_11 {dimension_numbers = #tpu.dot_dimension_numbers<[1], [0], [0], [1], [0, 0, 1, 1], [], []>} : vector<8x32xf32>, vector<32x128xf32>, vector<8x128xf32> -> vector<8x128xf32>
    %c0_12 = arith.constant 0 : index
    %c0_13 = arith.constant 0 : index
    %24 = vector.load %arg4[%c0_12, %c0_13] : memref<1x128xf32, #tpu.memory_space<vmem>>, vector<1x128xf32>
    %25 = vector.broadcast %24 : vector<1x128xf32> to vector<8x128xf32>
    %26 = arith.addf %23, %25 : vector<8x128xf32>
    %cst_14 = arith.constant 5.000000e-01 : f32
    %27 = vector.broadcast %cst_14 : f32 to vector<8x128xf32>
    %28 = arith.mulf %27, %26 : vector<8x128xf32>
    %29 = math.tanh %28 : vector<8x128xf32>
    %cst_15 = arith.constant 5.000000e-01 : f32
    %30 = vector.broadcast %cst_15 : f32 to vector<8x128xf32>
    %31 = arith.mulf %30, %29 : vector<8x128xf32>
    %cst_16 = arith.constant 5.000000e-01 : f32
    %32 = vector.broadcast %cst_16 : f32 to vector<8x128xf32>
    %33 = arith.addf %31, %32 : vector<8x128xf32>
    %c0_17 = arith.constant 0 : index
    %c0_18 = arith.constant 0 : index
    %34 = vector.load %arg5[%c0_17, %c0_18] : memref<8x128xf32, #tpu.memory_space<vmem>>, vector<8x128xf32>
    tpu.vector_store %arg5[%c0_17, %c0_18], %33 {strides = array<i32>} : memref<8x128xf32, #tpu.memory_space<vmem>>, vector<8x128xf32>,
    return
  }
}

</mosaic_0001>

<bundles_post_ra>
// kernel: tpu_custom_call.1
= control target key start
LH: loop header
LB: loop body
LE: loop exit
PB: predicated region body
PF: predicated region fallthrough
CT: control target
= control target key end

     0   :  { %10 = vsyncpa [#allocation3], 0  ;;  %s393_s0 = inlined_call_operand.hbm [shape: f32[8,32], index: 0, kind: input, shape index: {}]   ;;  %s394_s1 = inlined_call_operand.vmem [shape: f32[1,32], index: 1, kind: input, shape index: {}]   ;;  %s395_s2 = inlined_call_operand.vmem [shape: f32[1,32], index: 2, kind: input, shape index: {}]   ;;  %s396_s3 = inlined_call_operand.hbm [shape: f32[32,128], index: 3, kind: input, shape index: {}]   ;;  %s397_s4 = inlined_call_operand.vmem [shape: f32[1,128], index: 4, kind: input, shape index: {}]   ;;  %s398_s5 = inlined_call_operand.hbm [shape: f32[8,128], index: 5, kind: output, shape index: {}]  }
   0x1   :  { %11 = vsyncpa [#allocation6], 0 }
   0x2   :  { %12 = vsyncpa [#allocation4], 0  ;;  %s300_s18 = smov [#allocation2]   ;;  %s301_s20 = smov [#allocation5]  }
   0x3   :  { %s19_s19 = sshll.u32 %s300_s18, 4  ;;  %s32_s21 = sshll.u32 %s301_s20, 4  ;;  %s20_s19 = int_to_ptr.vmem [resolvable:$true] %s19_s19  ;;  %s338_s21 = int_to_ptr.vmem [resolvable:$true] %s32_s21 }
   0x4   :  { %s228_s24 = scalar_lea.hbm %s393_s0, 128 }
   0x5   :  { %p229_p0 = scmp.ne.s32.totalorder %s393_s0, %s228_s24  ;;  %p232_p1 = scmp.lt.u32.totalorder %s228_s24, %s393_s0 }
   0x7   :  { %p234_p2 = pnand %p232_p1, %p229_p0 }
   0x9   :  { %237 = shalt.err (!%p234_p2)
}
   0xa   :  { %s238_s29 = scalar_lea.vmem %s20_s19, 128  ;;  %p243_p4 = scmp.lt.s32.totalorder %s20_s19, %s20_s19 }
   0xb   :  { %p239_p3 = scmp.ne.s32.totalorder %s20_s19, %s238_s29  ;;  %p244_p5 = scmp.lt.s32.totalorder %s238_s29, %s238_s29 }
   0xd   :  { %p245_p6 = por %p244_p5, %p243_p4 }
   0xf   :  { %p246_p7 = pnand %p245_p6, %p239_p3 }
  0x11   :  { %249 = shalt.err (!%p246_p7)
}
  0x12   :  { %22 = dma.hbm_to_vmem [thread:$0]  %s393_s0, 128, %s20_s19, [#allocation3]  }
  0x13   :  { %s250_s9 = scalar_lea.hbm %s396_s3, 512 }
  0x14   :  { %p251_p8 = scmp.ne.s32.totalorder %s396_s3, %s250_s9  ;;  %p254_p9 = scmp.lt.u32.totalorder %s250_s9, %s396_s3 }
  0x16   :  { %p256_p10 = pnand %p254_p9, %p251_p8 }
  0x18   :  { %259 = shalt.err (!%p256_p10)
}
  0x19   :  { %s260_s14 = scalar_lea.vmem %s338_s21, 512  ;;  %p265_p12 = scmp.lt.s32.totalorder %s338_s21, %s338_s21 }
  0x1a   :  { %p261_p11 = scmp.ne.s32.totalorder %s338_s21, %s260_s14  ;;  %p266_p13 = scmp.lt.s32.totalorder %s260_s14, %s260_s14 }
  0x1c   :  { %p267_p0 = por %p266_p13, %p265_p12 }
  0x1e   :  { %p268_p1 = pnand %p267_p0, %p261_p11 }
  0x20   :  { %271 = shalt.err (!%p268_p1)
}
  0x21   :  { %s302_s0 = smov 128   ;;  %s303_s15 = smov 8  }
  0x22   :  { %38 = dma.hbm_to_vmem [thread:$0]  %s396_s3, 512, %s338_s21, [#allocation6], %s302_s0, %s302_s0, %s303_s15  }
  0x23   :  { %294 = dma.done.wait [#allocation3], 128  }
  0x24   :  { %295 = vsyncadd [#allocation3], 4294967168 }
  0x25   :  { %296 = dma.done.wait [#allocation6], 512  }
  0x26   :  { %297 = vsyncadd [#allocation6], 4294966784  ;;  %v304_v0 = vmov 0.0|0.0   ;;  %vm305_vm0 = vmmov 0   ;;  %v306_v1 = vmov 0.0   ;;  %vm48_vm1 = vcmask 261120  }
  0x27   :  { %210 = vmatprep.subr.bf16.mxu0 %v304_v0  ;;  %207 = vmatprep.mubr.msk.f32.mxu0 %vm305_vm0, %v306_v1  ;;  %v86_v2 = vld [vmem:[#allocation5] sm:$0xff]  ;;  %v87_v3 = vld [vmem:[#allocation5 + $0x8] sm:$0xff]  ;;  %v88_v4 = vld [vmem:[#allocation5 + $0x10] sm:$0xff]  ;;  %v72_v28 = vlaneseq }
  0x28   :  { %v211_v5 = vpack.c.bf16 %v87_v3, %v86_v2  ;;  %v89_v6 = vld [vmem:[#allocation5 + $0x18] sm:$0xff] }
  0x29   :  { %v47_v7 = vld [vmem:[#allocation2] sm:$0xff]  ;;  %v214_v9 = vpack.c.bf16 %v89_v6, %v88_v4  ;;  %v73_v29 = vshrl.u32 %v72_v28, 7 }
  0x2a   :  { %v49_v8 = vsel %vm48_vm1, %v47_v7, 0.0  ;;  %212 = vmatpush3.bf16.msra.mxu0 %v211_v5  ;;  %v67_v30 = vld [vmem:[%s394_s1] sm:$0x1]  ;;  %s307_s1 = smov [#allocation7]  }
  0x2b   :  { %v50_v10 = vrot.slane %v49_v8, 4  ;;  %213 = vmatprep.subr.bf16.mxu0 %v304_v0  ;;  %v74_v31 = vsub.s32 0, %v73_v29  ;;  %v191_v35 = vld [vmem:[%s395_s2] ss:$0 sm:$0xff]  ;;  %s181_s23 = sshll.u32 %s307_s1, 4  ;;  %s182_s23 = int_to_ptr.vmem [resolvable:$true] %s181_s23 }
  0x2c   :  { %v192_v38 = vld [vmem:[%s397_s4] ss:$0 sm:$0xff]  ;;  %s272_s2 = scalar_lea.vmem %s182_s23, 128  ;;  %p277_p3 = scmp.lt.s32.totalorder %s182_s23, %s182_s23 }
  0x2d   :  { %v51_v11 = vadd.f32 %v50_v10, %v49_v8  ;;  %p273_p2 = scmp.ne.s32.totalorder %s182_s23, %s272_s2  ;;  %p278_p4 = scmp.lt.s32.totalorder %s272_s2, %s272_s2 }
  0x2e   :  { %215 = vmatpush3.bf16.msra.mxu0 %v214_v9 }
  0x2f   :  { %v52_v12 = vrot.slane %v51_v11, 2  ;;  %p279_p5 = por %p278_p4, %p277_p3 }
  0x31   :  { %v53_v13 = vadd.f32 %v52_v12, %v51_v11  ;;  %p280_p6 = pnand %p279_p5, %p273_p2 }
  0x33   :  { %v54_v14 = vrot.slane %v53_v13, 1 }
  0x35   :  { %v55_v15 = vadd.f32 %v54_v14, %v53_v13 }
  0x37   :  { %v56_v16 = vmul.f32 0.125, %v55_v15 }
  0x39   :  { %v57_v17 = vsub.f32 %v47_v7, %v56_v16 }
  0x3b   :  { %v58_v18 = vmul.f32 %v57_v17, %v57_v17 }
  0x3d   :  { %v59_v19 = vsel %vm48_vm1, %v58_v18, 0.0 }
  0x3e   :  { %v60_v20 = vrot.slane %v59_v19, 4 }
  0x40   :  { %v61_v21 = vadd.f32 %v60_v20, %v59_v19 }
  0x42   :  { %v62_v22 = vrot.slane %v61_v21, 2 }
  0x44   :  { %v63_v23 = vadd.f32 %v62_v22, %v61_v21 }
  0x46   :  { %v64_v24 = vrot.slane %v63_v23, 1 }
  0x48   :  { %v65_v25 = vadd.f32 %v64_v24, %v63_v23 }
  0x4a   :  { %v66_v26 = vmul.f32 0.125, %v65_v25 }
  0x4c   :  { %v68_v27 = vadd.f32 1e-05, %v66_v26 }
  0x4e   :  { %224 = vrsqrt.f32 %v68_v27 }
  0x58   :  { %v225_v32 = vpop.eup %224 }
  0x59   :  { %v70_v33 = vmul.f32 %v225_v32, %v67_v30 }
  0x5b   :  { %v75_v34 = vrot.slane %v70_v33, %v74_v31 }
  0x5d   :  { %v77_v36 = vmul.f32 %v75_v34, %v57_v17 }
  0x5f   :  { %v85_v37 = vadd.f32 %v191_v35, %v77_v36 }
  0x61   :  { %208 = vmatmul.mubr.msk.f32.vlgmr.msra.gmra.mrb[0].mxu0 %vm48_vm1, %v85_v37 }
 0x134   :  { %v166_v39 = vpop.f32.mrb[0].mxu0 }
 0x135   :  { %v167_v40 = vadd.f32 %v192_v38, %v166_v39  ;;  %v209_v41 = vpop.f32.mrb[1].mxu0 }
 0x137   :  { %v170_v42 = vmul.f32 0.5, %v167_v40 }
 0x139   :  { %226 = vtanh.f32 %v170_v42 }
 0x143   :  { %v227_v43 = vpop.eup %226 }
 0x144   :  { %v172_v44 = vmul.f32 0.5, %v227_v43 }
 0x146   :  { %v173_v45 = vadd.f32 0.5, %v172_v44 }
 0x148   :  { %174 = vst [vmem:[#allocation7] sm:$0xff] %v173_v45 }
 0x149   :  { %283 = shalt.err (!%p280_p6)
}
 0x14a   :  { %s284_s25 = scalar_lea.hbm %s398_s5, 128 }
 0x14b   :  { %p285_p7 = scmp.ne.s32.totalorder %s398_s5, %s284_s25  ;;  %p288_p8 = scmp.lt.u32.totalorder %s284_s25, %s398_s5 }
 0x14d   :  { %p290_p9 = pnand %p288_p8, %p285_p7 }
 0x14f   :  { %293 = shalt.err (!%p290_p9)
}
 0x150   :  { %184 = dma.vmem_to_hbm [thread:$0]  %s182_s23, 128, %s398_s5, [#allocation4]  }
 0x151   :  { %298 = dma.done.wait [#allocation4], 128  }
 0x152   :  { %299 = vsyncadd [#allocation4], 4294967168 }
 0x153   :  { %188 = vsyncpa [#allocation3], 1 }
 0x154   :  { %189 = vsyncpa [#allocation6], 1 }
 0x155   :  { %190 = vsyncpa [#allocation4], 1 }

</bundles_post_ra>
